<compile_context>
chip_gen: v5e
topology: v5e:2x2
jax: 0.10.0
libtpu: 0.0.40
codegen_flags: <defaults>
</compile_context>

<pallas_src>
import jax
import jax.numpy as jnp
from jax.experimental import pallas as pl
from jax.experimental.pallas import tpu as pltpu


def attention_kernel(x_ref, w1_ref, b1_ref, w2_ref, b2_ref, out_ref, attn_ref):
    # x_ref: (Bb, N, D), w1_ref: (D, A), b1_ref: (1, A), w2_ref: (1, A), b2_ref: (1, 1)
    # out_ref: (Bb, N, D), attn_ref: (1, Bb, N)
    Bb, N, D = x_ref.shape
    A = w1_ref.shape[1]

    x = x_ref[...]                                                   # (Bb, N, D)
    x2d = x.reshape(Bb * N, D)                                       # one big MXU matmul

    # Linear(input_dim -> attention_dim) + Tanh, f32 accumulation.
    h2d = jnp.tanh(
        jnp.dot(x2d, w1_ref[...], preferred_element_type=jnp.float32)
        + b1_ref[...]                                                # (1, A) broadcast, added once
    )                                                                # (Bb*N, A) f32
    h = h2d.reshape(Bb, N, A)

    # Linear(attention_dim -> 1): VPU mul + lane reduction (avoid a width-1 MXU matmul).
    scores = jnp.sum(h * w2_ref[...], axis=-1) + b2_ref[...]         # (Bb, N), lane-dense

    # Softmax over the sequence axis (PyTorch dim=1), numerically stable, lane reduction.
    m = jnp.max(scores, axis=-1, keepdims=True)                      # (Bb, 1)
    e = jnp.exp(scores - m)                                          # (Bb, N)
    s = jnp.sum(e, axis=-1, keepdims=True)                           # (Bb, 1)
    w = e * pl.reciprocal(s, approx=True)                            # (Bb, N)

    # attended_features = features * attention_weights (broadcast over D)
    out_ref[...] = (x * w[:, :, None]).astype(out_ref.dtype)
    attn_ref[0] = w.astype(attn_ref.dtype)                           # lane-dense store


def _pick_block_b(B, max_block=32):
    """Largest divisor of B that is <= max_block and keeps >= 2 grid steps (v7x: 2 TCs)."""
    best = 1
    for bb in range(1, min(B, max_block) + 1):
        if B % bb == 0 and (B // bb >= 2 or B == 1):
            best = bb
    return best


def attention_layer(features, w1, b1, w2, b2, *, block_b=None):
    """features: (B, N, D); w1: (D, A); b1: (1, A); w2: (A, 1); b2: (1, 1)."""
    B, N, D = features.shape
    A = w1.shape[1]
    Bb = _pick_block_b(B) if block_b is None else block_b
    assert B % Bb == 0
    G = B // Bb

    w2_row = w2.reshape(1, A)          # (A, 1) -> (1, A) for the lane reduction
    b1 = b1.reshape(1, A)
    b2 = b2.reshape(1, 1)

    itemsize = jnp.dtype(features.dtype).itemsize
    cost = pl.CostEstimate(
        flops=2 * B * N * D * A + 2 * B * N * A + B * N * D,
        transcendentals=B * N * (A + 1),
        bytes_accessed=(2 * B * N * D + D * A + B * N) * itemsize,
    )

    attended, attn = pl.pallas_call(
        attention_kernel,
        out_shape=(
            jax.ShapeDtypeStruct((B, N, D), features.dtype),   # attended_features
            jax.ShapeDtypeStruct((G, Bb, N), features.dtype),  # lane-dense attention weights
        ),
        grid_spec=pltpu.PrefetchScalarGridSpec(
            num_scalar_prefetch=0,
            grid=(G,),
            in_specs=[
                pl.BlockSpec((Bb, N, D), lambda g: (g, 0, 0)),   # features tile
                pl.BlockSpec((D, A), lambda g: (0, 0)),          # W1 (resident)
                pl.BlockSpec((1, A), lambda g: (0, 0)),          # b1
                pl.BlockSpec((1, A), lambda g: (0, 0)),          # W2 row
                pl.BlockSpec((1, 1), lambda g: (0, 0)),          # b2
            ],
            out_specs=[
                pl.BlockSpec((Bb, N, D), lambda g: (g, 0, 0)),
                pl.BlockSpec((1, Bb, N), lambda g: (g, 0, 0)),
            ],
        ),
        compiler_params=pltpu.CompilerParams(
            dimension_semantics=("parallel",),
        ),
        cost_estimate=cost,
    )(features, w1, b1, w2_row, b2)

    # Restore the PyTorch output shape (B, N, 1).
    attn_weights = attn.reshape(B, N, 1)
    return attended, attn_weights


def reference(features, w1, b1, w2, b2):
    h = jnp.tanh(features @ w1 + b1)                # (B, N, A)
    scores = h @ w2 + b2                            # (B, N, 1)
    weights = jax.nn.softmax(scores, axis=1)        # softmax over dim=1
    return features * weights, weights


if __name__ == "__main__":
    # Small shapes consistent with the module's forward semantics.
    B, N, D, A = 16, 16, 32, 128

    key = jax.random.PRNGKey(0)
    kx, k1, k2, k3, k4 = jax.random.split(key, 5)

    features = jax.random.normal(kx, (B, N, D), dtype=jnp.float32)

    # Deterministic PyTorch-Linear-style init: U(-1/sqrt(fan_in), 1/sqrt(fan_in)).
    bound1 = 1.0 / jnp.sqrt(jnp.float32(D))
    bound2 = 1.0 / jnp.sqrt(jnp.float32(A))
    w1 = jax.random.uniform(k1, (D, A), jnp.float32, -bound1, bound1)
    b1 = jax.random.uniform(k2, (1, A), jnp.float32, -bound1, bound1)
    w2 = jax.random.uniform(k3, (A, 1), jnp.float32, -bound2, bound2)
    b2 = jax.random.uniform(k4, (1, 1), jnp.float32, -bound2, bound2)

    attended, weights = attention_layer(features, w1, b1, w2, b2)
    jax.block_until_ready((attended, weights))

    ref_attended, ref_weights = reference(features, w1, b1, w2, b2)
    # Slightly relaxed tolerance: softmax denominator uses the approximate
    # EUP reciprocal (pl.reciprocal(approx=True)), ~1e-4 relative error.
    assert jnp.allclose(attended, ref_attended, atol=1e-3, rtol=1e-3)
    assert jnp.allclose(weights, ref_weights, atol=1e-3, rtol=1e-3)
    assert attended.shape == (B, N, D) and weights.shape == (B, N, 1)

    print("KERNEL_OK")
</pallas_src>

<mosaic_0001>
module attributes {stable_mosaic.version = 11 : i64} {
  func.func @attention_kernel(%arg0: i32, %arg1: memref<8x16x32xf32, #tpu.memory_space<vmem>>, %arg2: memref<32x128xf32, #tpu.memory_space<vmem>>, %arg3: memref<1x128xf32, #tpu.memory_space<vmem>>, %arg4: memref<1x128xf32, #tpu.memory_space<vmem>>, %arg5: memref<1x1xf32, #tpu.memory_space<vmem>>, %arg6: memref<8x16x32xf32, #tpu.memory_space<vmem>>, %arg7: memref<1x8x16xf32, #tpu.memory_space<vmem>>) attributes {dimension_semantics = [#tpu.dimension_semantics<parallel>], iteration_bounds = array<i64: 2>, scalar_prefetch = 0 : i64, scratch_operands = 0 : i64, tpu.core_type = #tpu.core_type<tc>, window_params = [{transform_indices = @transform_0, window_bounds = array<i64: 8, 16, 32>}, {pipeline_mode = #tpu.pipeline_mode<synchronous>, transform_indices = @transform_1, window_bounds = array<i64: 32, 128>}, {pipeline_mode = #tpu.pipeline_mode<synchronous>, transform_indices = @transform_2, window_bounds = array<i64: 1, 128>}, {pipeline_mode = #tpu.pipeline_mode<synchronous>, transform_indices = @transform_3, window_bounds = array<i64: 1, 128>}, {pipeline_mode = #tpu.pipeline_mode<synchronous>, transform_indices = @transform_4, window_bounds = array<i64: 1, 1>}, {transform_indices = @transform_5, window_bounds = array<i64: 8, 16, 32>}, {transform_indices = @transform_6, window_bounds = array<i64: 1, 8, 16>}]} {
    %c0 = arith.constant 0 : index
    %c0_0 = arith.constant 0 : index
    %c0_1 = arith.constant 0 : index
    %0 = vector.load %arg1[%c0, %c0_0, %c0_1] : memref<8x16x32xf32, #tpu.memory_space<vmem>>, vector<8x16x32xf32>
    %1 = vector.shape_cast %0 : vector<8x16x32xf32> to vector<128x32xf32>
    %c0_2 = arith.constant 0 : index
    %c0_3 = arith.constant 0 : index
    %2 = vector.load %arg2[%c0_2, %c0_3] : memref<32x128xf32, #tpu.memory_space<vmem>>, vector<32x128xf32>
    %cst = arith.constant dense<0.000000e+00> : vector<128x128xf32>
    %3 = tpu.matmul %1, %2, %cst {dimension_numbers = #tpu.dot_dimension_numbers<[1], [0], [0], [1], [0, 0, 1, 1], [], []>} : vector<128x32xf32>, vector<32x128xf32>, vector<128x128xf32> -> vector<128x128xf32>
    %c0_4 = arith.constant 0 : index
    %c0_5 = arith.constant 0 : index
    %4 = vector.load %arg3[%c0_4, %c0_5] : memref<1x128xf32, #tpu.memory_space<vmem>>, vector<1x128xf32>
    %5 = vector.broadcast %4 : vector<1x128xf32> to vector<128x128xf32>
    %6 = arith.addf %3, %5 : vector<128x128xf32>
    %7 = math.tanh %6 : vector<128x128xf32>
    %8 = vector.shape_cast %7 : vector<128x128xf32> to vector<8x16x128xf32>
    %c0_6 = arith.constant 0 : index
    %c0_7 = arith.constant 0 : index
    %9 = vector.load %arg4[%c0_6, %c0_7] : memref<1x128xf32, #tpu.memory_space<vmem>>, vector<1x128xf32>
    %10 = vector.shape_cast %9 : vector<1x128xf32> to vector<1x1x128xf32>
    %11 = vector.broadcast %10 : vector<1x1x128xf32> to vector<8x16x128xf32>
    %12 = arith.mulf %8, %11 : vector<8x16x128xf32>
    %cst_8 = arith.constant dense<0.000000e+00> : vector<8x16xf32>
    %13 = vector.multi_reduction <add>, %12, %cst_8 [2] : vector<8x16x128xf32> to vector<8x16xf32>
    %c0_9 = arith.constant 0 : index
    %c0_10 = arith.constant 0 : index
    %14 = vector.load %arg5[%c0_9, %c0_10] : memref<1x1xf32, #tpu.memory_space<vmem>>, vector<1x1xf32>
    %15 = vector.broadcast %14 : vector<1x1xf32> to vector<8x16xf32>
    %16 = arith.addf %13, %15 : vector<8x16xf32>
    %cst_11 = arith.constant dense<0xFF800000> : vector<8xf32>
    %17 = vector.multi_reduction <maximumf>, %16, %cst_11 [1] : vector<8x16xf32> to vector<8xf32>
    %18 = vector.shape_cast %17 : vector<8xf32> to vector<8x1xf32>
    %19 = vector.broadcast %18 : vector<8x1xf32> to vector<8x16xf32>
    %20 = arith.subf %16, %19 : vector<8x16xf32>
    %21 = math.exp %20 : vector<8x16xf32>
    %cst_12 = arith.constant dense<0.000000e+00> : vector<8xf32>
    %22 = vector.multi_reduction <add>, %21, %cst_12 [1] : vector<8x16xf32> to vector<8xf32>
    %23 = vector.shape_cast %22 : vector<8xf32> to vector<8x1xf32>
    %24 = tpu.reciprocal %23 {approx = true} : vector<8x1xf32> -> vector<8x1xf32>
    %25 = vector.broadcast %24 : vector<8x1xf32> to vector<8x16xf32>
    %26 = arith.mulf %21, %25 : vector<8x16xf32>
    %27 = vector.shape_cast %26 : vector<8x16xf32> to vector<8x16x1xf32>
    %28 = vector.broadcast %27 : vector<8x16x1xf32> to vector<8x16x32xf32>
    %29 = arith.mulf %0, %28 : vector<8x16x32xf32>
    %c0_13 = arith.constant 0 : index
    %c0_14 = arith.constant 0 : index
    %c0_15 = arith.constant 0 : index
    %30 = vector.load %arg6[%c0_13, %c0_14, %c0_15] : memref<8x16x32xf32, #tpu.memory_space<vmem>>, vector<8x16x32xf32>
    tpu.vector_store %arg6[%c0_13, %c0_14, %c0_15], %29 {strides = array<i32>} : memref<8x16x32xf32, #tpu.memory_space<vmem>>, vector<8x16x32xf32>,
    %c0_16 = arith.constant 0 : index
    %c0_17 = arith.constant 0 : index
    %c0_18 = arith.constant 0 : index
    %31 = vector.load %arg7[%c0_16, %c0_17, %c0_18] : memref<1x8x16xf32, #tpu.memory_space<vmem>>, vector<1x8x16xf32>
    %32 = vector.shape_cast %31 : vector<1x8x16xf32> to vector<8x16xf32>
    %33 = vector.shape_cast %26 : vector<8x16xf32> to vector<1x8x16xf32>
    tpu.vector_store %arg7[%c0_16, %c0_17, %c0_18], %33 {strides = array<i32>} : memref<1x8x16xf32, #tpu.memory_space<vmem>>, vector<1x8x16xf32>,
    return
  }
  func.func @transform_0(%arg0: i32) -> (i32, i32, i32) {
    %c0_i32 = arith.constant 0 : i32
    %c0_i32_0 = arith.constant 0 : i32
    %c0_i32_1 = arith.constant 0 : i32
    return %arg0, %c0_i32, %c0_i32_0 : i32, i32, i32
  }
  func.func @transform_1(%arg0: i32) -> (i32, i32) {
    %c0_i32 = arith.constant 0 : i32
    %c0_i32_0 = arith.constant 0 : i32
    %c0_i32_1 = arith.constant 0 : i32
    return %c0_i32, %c0_i32_0 : i32, i32
  }
  func.func @transform_2(%arg0: i32) -> (i32, i32) {
    %c0_i32 = arith.constant 0 : i32
    %c0_i32_0 = arith.constant 0 : i32
    %c0_i32_1 = arith.constant 0 : i32
    return %c0_i32, %c0_i32_0 : i32, i32
  }
  func.func @transform_3(%arg0: i32) -> (i32, i32) {
    %c0_i32 = arith.constant 0 : i32
    %c0_i32_0 = arith.constant 0 : i32
    %c0_i32_1 = arith.constant 0 : i32
    return %c0_i32, %c0_i32_0 : i32, i32
  }
  func.func @transform_4(%arg0: i32) -> (i32, i32) {
    %c0_i32 = arith.constant 0 : i32
    %c0_i32_0 = arith.constant 0 : i32
    %c0_i32_1 = arith.constant 0 : i32
    return %c0_i32, %c0_i32_0 : i32, i32
  }
  func.func @transform_5(%arg0: i32) -> (i32, i32, i32) {
    %c0_i32 = arith.constant 0 : i32
    %c0_i32_0 = arith.constant 0 : i32
    %c0_i32_1 = arith.constant 0 : i32
    return %arg0, %c0_i32, %c0_i32_0 : i32, i32, i32
  }
  func.func @transform_6(%arg0: i32) -> (i32, i32, i32) {
    %c0_i32 = arith.constant 0 : i32
    %c0_i32_0 = arith.constant 0 : i32
    %c0_i32_1 = arith.constant 0 : i32
    return %arg0, %c0_i32, %c0_i32_0 : i32, i32, i32
  }
}

</mosaic_0001>

<bundles_post_ra>
// kernel: tpu_custom_call.1
= control target key start
LH: loop header
LB: loop body
LE: loop exit
PB: predicated region body
PF: predicated region fallthrough
CT: control target
= control target key end

     0   :  { %s2088_s0 = inlined_call_operand.hbm [shape: f32[16,16,32], index: 0, kind: input, shape index: {}]   ;;  %s2089_s1 = inlined_call_operand.hbm [shape: f32[32,128], index: 1, kind: input, shape index: {}]   ;;  %s2090_s2 = inlined_call_operand.vmem [shape: f32[1,128], index: 2, kind: input, shape index: {}]   ;;  %s2091_s3 = inlined_call_operand.vmem [shape: f32[1,128], index: 3, kind: input, shape index: {}]   ;;  %s2092_s4 = inlined_call_operand.<no memory space> [shape: f32[1,1], index: 4, kind: input, shape index: {}]   ;;  %s2093_s5 = inlined_call_operand.hbm [shape: f32[16,16,32], index: 5, kind: output, shape index: {0}]   ;;  %s2094_s6 = inlined_call_operand.hbm [shape: f32[2,8,16], index: 6, kind: output, shape index: {1}]  }
   0x1   :  { %v12_v0 = vstv %s2092_s4 }
   0x2   :  { %13 = vst [vmem:[#allocation2] sm:$0x1] %v12_v0 }
   0x3   :  { %14 = vsyncpa [#allocation4], 0 }
   0x4   :  { %16 = vsyncpa [#allocation4 + $0x1], 0 }
   0x5   :  { %17 = vsyncpa [#allocation7], 0 }
   0x6   :  { %18 = vsyncpa [#allocation5], 0 }
   0x7   :  { %20 = vsyncpa [#allocation5 + $0x1], 0 }
   0x8   :  { %21 = vsyncpa [#allocation10], 0 }
   0x9   :  { %23 = vsyncpa [#allocation10 + $0x1], 0  ;;  %s1492_s23 = smov 0   ;;  %s1494_s24 = smov 0  }
   0xa   :  { %s1496_s25 = smov 0   ;;  %s1498_s26 = smov 0  }
   0xb LB: > { %s1513_s4 = sadd.s32 4294967295, %s1446_s26   ;;  %s1092_s27 = sadd.s32 4294967294, %s1446_s26   ;;  %s1446_s26 = sphi %s1498_s26, %s2106_s26   ;;  %s1442_s25 = sphi %s1496_s25, %s2105_s25   ;;  %s1438_s24 = sphi %s1494_s24, %s2104_s24   ;;  %s1434_s23 = sphi %s1492_s23, %s2103_s23  }
   0xc   : > { %p49_p0 = scmp.ne.s32.totalorder %s1438_s24, %s1434_s23  ;;  %p50_p1 = scmp.eq.s32.totalorder %s1513_s4, 0 }
   0xd   : > { %p157_p2 = scmp.eq.s32.totalorder %s1513_s4, 1  ;;  %p163_p3 = scmp.eq.s32.totalorder %s1092_s27, 1 }
   0xe   : > { %p1522_p4 = por %p50_p1, %p49_p0  ;;  %p1093_p5 = scmp.ge.s32.totalorder %s1446_s26, 1 }
   0xf   : > { %p1527_p6 = por %p163_p3, %p49_p0  ;;  %p196_p7 = scmp.lt.s32.totalorder %s1446_s26, 3 }
  0x10   : > { %s207_s8 = sshll.u32 %s2089_s1, 4  ;;  %s1448_s10 = smov [#allocation6]   ;;  %s208_s8 = int_to_ptr.hbm [resolvable:$true] %s207_s8 }
  0x11   : > { %p1535_p8 = pnand %p1093_p5, %p196_p7  ;;  %s209_s11 = sshll.u32 %s1448_s10, 4  ;;  %s210_s11 = int_to_ptr.vmem [resolvable:$true] %s209_s11 }
  0x12   : > { %s1545_s12 = sadd.s32 1, %s1446_s26   ;;  %s2095_s13 = smov 128  }
  0x13   : > { %p1155_p9 = pneg %p1535_p8  ;;  %s1450_s14 = smov 8  }
  0x14   : > { %s33_s15 = ssub.s32 %s1446_s26, %s1545_s12  ;;  %s36_s16 = sadd.s32 1, %s1442_s25 }
  0x15   : > { %p1156_p10 = pnand %p1155_p9, %p50_p1  ;;  %p34_p12 = scmp.eq.s32.totalorder %s33_s15, 0 }
  0x16   : > { %p43_p13 = scmp.ne.s32.totalorder %s1442_s25, %s1438_s24  ;;  %p44_p0 = scmp.eq.s32.totalorder %s1446_s26, 0 }
  0x17   : > { %1158 = dma.hbm_to_vmem [thread:$0]  (!%p1156_p10), %s208_s8, 512, %s210_s11, [#allocation7], %s2095_s13, %s2095_s13, %s1450_s14  }
  0x18   : > { %s1557_s17 = scalar_select %p34_p12, %s1442_s25, %s36_s16  }
  0x19   : > { %p1561_p3 = por %p157_p2, %p43_p13  ;;  %p1171_p5 = scmp.lt.s32.totalorder %s1446_s26, 2 }
  0x1a   : > { %s232_s19 = sand.u32 1, %s1442_s25   ;;  %s1130_s20 = sshll.u32 %s1446_s26, 7 }
  0x1b   : > { %p45_p7 = por %p44_p0, %p43_p13  ;;  %s1096_s21 = sshll.u32 %s232_s19, 7 }
  0x1c   : > { %s242_s30 = scalar_lea.hbm %s2088_s0, %s1130_s20  ;;  %s236_s8 = scalar_lea.vmem [#allocation3], %s1096_s21 }
  0x1d   : > { %s243_s7 = sshll.u32 %s242_s30, 4  ;;  %s245_s10 = sshll.u32 %s236_s8, 4  ;;  %s244_s7 = int_to_ptr.hbm [resolvable:$true] %s243_s7  ;;  %s246_s10 = int_to_ptr.vmem [resolvable:$true] %s245_s10 }
  0x1e   : > { %p1571_p9 = pnand %p1171_p5, %p45_p7  ;;  %s233_s15 = scalar_lea.sflag [#allocation4], %s232_s19 }
  0x1f   : > { %s1314_s16 = sshra.s32 %s244_s7, 4  ;;  %s1321_s21 = scalar_lea.hbm %s2088_s0, 256  ;;  %s1315_s16 = int_to_ptr.hbm [resolvable:$true] %s1314_s16 }
  0x20   : > { %s1316_s13 = scalar_lea.hbm %s1315_s16, 128  ;;  %p1318_p10 = pneg %p1571_p9 }
  0x21   : > { %p1317_p2 = scmp.ne.s32.totalorder %s1315_s16, %s1316_s13  ;;  %p1322_p0 = scmp.lt.s32.totalorder %s1315_s16, %s2088_s0 }
  0x22   : > { %p1323_p5 = scmp.lt.s32.totalorder %s1321_s21, %s1316_s13 }
  0x23   : > { %p1319_p12 = pnand %p1318_p10, %p1317_p2 }
  0x24   : > { %p1324_p7 = por %p1323_p5, %p1322_p0 }
  0x25   : > { %p1320_p13 = pneg %p1319_p12 }
  0x27   : > { %p1325_p11 = pnand %p1324_p7, %p1320_p13 }
  0x29   : > { %1328 = shalt.err (!%p1325_p11)
}
  0x2a   : > { %s2101_s19 = smov 128   ;;  %257 = sbr.rel (%p1535_p8) target bundleno = 973 (0x3cd), region = 40 }
  0x2b   : > { %1162 = dma.hbm_to_vmem [thread:$0]  (!%p1571_p9), %s244_s7, 2048, %s246_s10, %s233_s15, %s2101_s19, %s2101_s19, %s1450_s14  }
  0x2c   : > { %s1591_s8 = sand.u32 (!%p1535_p8), 1, %s1438_s24  }
  0x2d   : > { %s1101_s13 = sshll.u32 (!%p1535_p8), %s1591_s8, 7  ;;  %s260_s16 = scalar_lea.sflag (!%p1535_p8), [#allocation4], %s1591_s8 }
  0x2e   : > { %s1597_s20 = scalar_lea.vmem (!%p1535_p8), [#allocation3], %s1101_s13 }
  0x2f   : > { %1417 = dma.done.wait (%p1522_p4), %s260_s16, 2048  }
  0x30   : > { %1419 = vsyncadd (%p1522_p4), %s260_s16, 4294965248 }
  0x31   : > { %1421 = dma.done.wait (%p50_p1), [#allocation7], 512  }
  0x32   : > { %1423 = vsyncadd (%p50_p1), [#allocation7], 4294966784  ;;  %v324_v1 = vld [vmem:[#allocation6 + $0x18] sm:$0xff]  ;;  %v323_v2 = vld [vmem:[#allocation6 + $0x10] sm:$0xff]  ;;  %vm329_vm0 = vcmask 261120   ;;  %vm555_vm1 = vcmask 130112  }
  0x33   : > { %390 = vmatpush.msra.mxu0 %v324_v1  ;;  %1134 = vmatpush.msra.mxu2 %v324_v1  ;;  %v322_v3 = vld [vmem:[#allocation6 + $0x8] sm:$0xff]  ;;  %v321_v4 = vld [vmem:[#allocation6] sm:$0xff]  ;;  %v1648_v13 = vld [vmem:[%s1597_s20 + $0x10] sm:$0xff]  ;;  %vm578_vm2 = vcmask 1041409   ;;  %vm580_vm3 = vcmask 1042434   ;;  %vm582_vm4 = vcmask 1043459  }
  0x34   : > { %1135 = vmatpush.msra.mxu3 %v324_v1  ;;  %1133 = vmatpush.msra.mxu1 %v324_v1  ;;  %v1608_v5 = vld [vmem:[%s1597_s20] sm:$0xff]  ;;  %v1628_v9 = vld [vmem:[%s1597_s20 + $0x8] sm:$0xff]  ;;  %v1651_v14 = vld [vmem:[%s1597_s20 + $0x50] sm:$0xff]  ;;  %vm584_vm5 = vcmask 1044484   ;;  %vm586_vm6 = vcmask 1045509   ;;  %vm588_vm7 = vcmask 1046534  }
  0x35   : > { %391 = vmatpush.msra.mxu0 %v323_v2  ;;  %1137 = vmatpush.msra.mxu2 %v323_v2  ;;  %v1611_v6 = vld [vmem:[%s1597_s20 + $0x40] sm:$0xff]  ;;  %v1631_v10 = vld [vmem:[%s1597_s20 + $0x48] sm:$0xff]  ;;  %v1654_v15 = vld [vmem:[%s1597_s20 + $0x70] sm:$0xff]  ;;  %vm590_vm8 = vcmask 1047559   ;;  %vm593_vm9 = vcmask 130048   ;;  %s1934_s10 = scalar_lea.vmem [#allocation8], %s1101_s13 }
  0x36   : > { %1138 = vmatpush.msra.mxu3 %v323_v2  ;;  %1136 = vmatpush.msra.mxu1 %v323_v2  ;;  %v1614_v7 = vld [vmem:[%s1597_s20 + $0x60] sm:$0xff]  ;;  %v1634_v11 = vld [vmem:[%s1597_s20 + $0x68] sm:$0xff]  ;;  %v1659_v16 = vld [vmem:[%s1597_s20 + $0x30] sm:$0xff]  ;;  %s1132_s11 = sshll.u32 %s1513_s4, 7  ;;  %s1104_s27 = sshll.u32 %s1591_s8, 3 }
  0x37   : > { %392 = vmatpush.msra.mxu0 %v322_v3  ;;  %1140 = vmatpush.msra.mxu2 %v322_v3  ;;  %v1619_v8 = vld [vmem:[%s1597_s20 + $0x20] sm:$0xff]  ;;  %v1639_v12 = vld [vmem:[%s1597_s20 + $0x28] sm:$0xff]  ;;  %v1668_v17 = vld [vmem:[%s1597_s20 + $0x18] sm:$0xff]  ;;  %s958_s21 = scalar_lea.hbm %s2093_s5, %s1132_s11  ;;  %s1126_s30 = sshll.u32 %s1513_s4, 3 }
  0x38   : > { %1141 = vmatpush.msra.mxu3 %v322_v3  ;;  %1139 = vmatpush.msra.mxu1 %v322_v3  ;;  %v1671_v18 = vld [vmem:[%s1597_s20 + $0x58] sm:$0xff]  ;;  %s959_s19 = sshll.u32 %s1934_s10, 4  ;;  %s961_s13 = sshll.u32 %s958_s21, 4  ;;  %s2017_s19 = int_to_ptr.vmem [resolvable:$true] %s959_s19  ;;  %s2019_s13 = int_to_ptr.hbm [resolvable:$true] %s961_s13 }
  0x39   : > { %393 = vmatpush.msra.mxu0 %v321_v4  ;;  %1143 = vmatpush.msra.mxu2 %v321_v4  ;;  %v1674_v19 = vld [vmem:[%s1597_s20 + $0x78] sm:$0xff]  ;;  %s2024_s28 = scalar_lea.vmem [#allocation9], %s1104_s27  ;;  %s941_s7 = scalar_lea.sflag [#allocation5], %s1591_s8 }
  0x3a   : > { %1144 = vmatpush.msra.mxu3 %v321_v4  ;;  %1105 = vmatmul.msk.f32.vlgmr.msra.gmra.mxu0 %vm329_vm0, %v1608_v5  ;;  %v1679_v20 = vld [vmem:[%s1597_s20 + $0x38] sm:$0xff]  ;;  %s974_s20 = scalar_lea.hbm %s2094_s6, %s1126_s30  ;;  %s976_s9 = sshll.u32 %s2024_s28, 4  ;;  %s2035_s9 = int_to_ptr.vmem [resolvable:$true] %s976_s9 }
  0x3b   : > { %1113 = vmatmul.msk.f32.vlgmr.msra.gmra.mxu2 %vm329_vm0, %v1611_v6  ;;  %1117 = vmatmul.msk.f32.vlgmr.msra.gmra.mxu3 %vm329_vm0, %v1614_v7  ;;  %v1690_v21 = vld [vmem:[%s2090_s2] ss:$0 sm:$0xff]  ;;  %s978_s14 = sshll.u32 %s974_s20, 4  ;;  %s1358_s11 = sshra.s32 %s2019_s13, 4  ;;  %s2037_s14 = int_to_ptr.hbm [resolvable:$true] %s978_s14  ;;  %s1359_s11 = int_to_ptr.hbm [resolvable:$true] %s1358_s11 }
  0x3c   : > { %1142 = vmatpush.msra.mxu1 %v321_v4  ;;  %v1697_v26 = vld [vmem:[%s2091_s3] ss:$0 sm:$0xff]  ;;  %s1360_s15 = scalar_lea.hbm %s1359_s11, 128  ;;  %s1364_s21 = scalar_lea.hbm %s2093_s5, 256 }
  0x3d   : > { %1109 = vmatmul.msk.f32.vlgmr.msra.gmra.mxu1 %vm329_vm0, %v1619_v8  ;;  %p1361_p1 = scmp.ne.s32.totalorder %s1359_s11, %s1360_s15  ;;  %p1365_p11 = scmp.lt.s32.totalorder %s1359_s11, %s2093_s5 }
  0x3e   : > { %p1366_p9 = scmp.lt.s32.totalorder %s1364_s21, %s1360_s15 }
  0x3f   : > { %p1362_p4 = pnand %p1361_p1, %p1561_p3 }
  0x40   : > { %p1367_p2 = por %p1366_p9, %p1365_p11 }
  0x41   : > { %p1363_p8 = pneg %p1362_p4 }
  0x42   : > { %1106 = vmatmul.msk.f32.gmra.mxu0 %vm329_vm0, %v1628_v9 }
  0x43   : > { %1114 = vmatmul.msk.f32.gmra.mxu2 %vm329_vm0, %v1631_v10  ;;  %1118 = vmatmul.msk.f32.gmra.mxu3 %vm329_vm0, %v1634_v11  ;;  %p1368_p10 = pnand %p1367_p2, %p1363_p8 }
  0x45   : > { %1110 = vmatmul.msk.f32.gmra.mxu1 %vm329_vm0, %v1639_v12 }
  0x4a   : > { %1107 = vmatmul.msk.f32.gmra.mxu0 %vm329_vm0, %v1648_v13 }
  0x4b   : > { %1115 = vmatmul.msk.f32.gmra.mxu2 %vm329_vm0, %v1651_v14  ;;  %1119 = vmatmul.msk.f32.gmra.mxu3 %vm329_vm0, %v1654_v15 }
  0x4d   : > { %1111 = vmatmul.msk.f32.gmra.mxu1 %vm329_vm0, %v1659_v16 }
  0x52   : > { %1108 = vmatmul.msk.f32.gmra.mxu0 %vm329_vm0, %v1668_v17 }
  0x53   : > { %1116 = vmatmul.msk.f32.gmra.mxu2 %vm329_vm0, %v1671_v18  ;;  %1120 = vmatmul.msk.f32.gmra.mxu3 %vm329_vm0, %v1674_v19 }
  0x55   : > { %1112 = vmatmul.msk.f32.gmra.mxu1 %vm329_vm0, %v1679_v20 }
  0xb7   : > { %v395_v22 = vpop.f32.mrf.mxu0 }
  0xb8   : > { %v396_v23 = vadd.f32 %v1690_v21, %v395_v22 }
  0xba   : > { %1218 = vtanh.f32 %v396_v23  ;;  %v407_v24 = vpop.f32.mrf.mxu1 }
  0xbb   : > { %v408_v25 = vadd.f32 %v1690_v21, %v407_v24  ;;  %v1451_v24 = vmov 0  }
  0xbc   : > { %1212 = vset.pattern.permute.xlu2 %v1451_v24  ;;  %1214 = vset.pattern.permute.xlu0 %v1451_v24 }
  0xbd   : > { %1220 = vtanh.f32 %v408_v25  ;;  %1213 = vset.pattern.permute.xlu1 %v1451_v24 }
  0xbe   : > { %v419_v27 = vpop.f32.mrf.mxu2  ;;  %v431_v28 = vpop.f32.mrf.mxu3 }
  0xbf   : > { %v420_v29 = vadd.f32 %v1690_v21, %v419_v27  ;;  %v432_v30 = vadd.f32 %v1690_v21, %v431_v28  ;;  %v398_v31 = vpop.f32.mrf.mxu0 }
  0xc0   : > { %v1219_v32 = vpop.eup %1218  ;;  %v399_v36 = vadd.f32 %v1690_v21, %v398_v31 }
  0xc1   : > { %1222 = vtanh.f32 %v420_v29  ;;  %v463_v33 = vmul.f32 %v1219_v32, %v1697_v26 }
  0xc2   : > { %1224 = vtanh.f32 %v432_v30  ;;  %v410_v34 = vpop.f32.mrf.mxu1 }
  0xc3   : > { %v1221_v35 = vpop.eup %1220  ;;  %479 = vadd.xlane.f32.xlu0 %v463_v33  ;;  %v411_v38 = vadd.f32 %v1690_v21, %v410_v34  ;;  %1226 = vtanh.f32 %v399_v36 }
  0xc4   : > { %v467_v37 = vmul.f32 %v1221_v35, %v1697_v26 }
  0xc5   : > { %1228 = vtanh.f32 %v411_v38 }
  0xc6   : > { %v422_v39 = vpop.f32.mrf.mxu2  ;;  %v434_v40 = vpop.f32.mrf.mxu3  ;;  %487 = vadd.xlane.f32.xlu2 %v467_v37 }
  0xc7   : > { %v1223_v41 = vpop.eup %1222  ;;  %v435_v42 = vadd.f32 %v1690_v21, %v434_v40  ;;  %v401_v43 = vpop.f32.mrf.mxu0  ;;  %v423_v48 = vadd.f32 %v1690_v21, %v422_v39 }
  0xc8   : > { %v1225_v44 = vpop.eup %1224  ;;  %v402_v46 = vadd.f32 %v1690_v21, %v401_v43  ;;  %v471_v47 = vmul.f32 %v1223_v41, %v1697_v26  ;;  %v1217_v41 = vld [vmem:[#allocation2] ss:$0 sm:$0xff] }
  0xc9   : > { %v475_v45 = vmul.f32 %v1225_v44, %v1697_v26  ;;  %1230 = vtanh.f32 %v435_v42  ;;  %v1227_v49 = vpop.eup %1226 }
  0xca   : > { %1232 = vtanh.f32 %v402_v46  ;;  %v413_v51 = vpop.f32.mrf.mxu1  ;;  %v464_v55 = vmul.f32 %v1227_v49, %v1697_v26 }
  0xcb   : > { %503 = vadd.xlane.f32.xlu0 %v475_v45  ;;  %v1229_v52 = vpop.eup %1228  ;;  %1234 = vtanh.f32 %v423_v48  ;;  %v414_v56 = vadd.f32 %v1690_v21, %v413_v51  ;;  %v550_v51 = vlaneseq }
  0xcc   : > { %v468_v58 = vmul.f32 %v1229_v52, %v1697_v26 }
  0xcd   : > { %1236 = vtanh.f32 %v414_v56 }
  0xce   : > { %v425_v50 = vpop.f32.mrf.mxu2  ;;  %495 = vadd.xlane.f32.xlu2 %v471_v47  ;;  %v437_v1 = vpop.f32.mrf.mxu3 }
  0xcf   : > { %v1231_v53 = vpop.eup %1230  ;;  %v426_v57 = vadd.f32 %v1690_v21, %v425_v50  ;;  %v404_v62 = vpop.f32.mrf.mxu0  ;;  %v438_v4 = vadd.f32 %v1690_v21, %v437_v1 }
  0xd0   : > { %v476_v54 = vmul.f32 %v1231_v53, %v1697_v26  ;;  %v1233_v59 = vpop.eup %1232  ;;  %v405_v3 = vadd.f32 %v1690_v21, %v404_v62 }
  0xd1   : > { %v1235_v60 = vpop.eup %1234  ;;  %1238 = vtanh.f32 %v426_v57  ;;  %v465_v0 = vmul.f32 %v1233_v59, %v1697_v26 }
  0xd2   : > { %505 = vadd.xlane.f32.xlu1 %v476_v54  ;;  %v472_v2 = vmul.f32 %v1235_v60, %v1697_v26  ;;  %v416_v28 = vpop.f32.mrf.mxu1  ;;  %v1729_v54 = vand.u32 127, %v550_v51 }
  0xd3   : > { %481 = vadd.xlane.f32.xlu0 %v464_v55  ;;  %v1237_v22 = vpop.eup %1236  ;;  %v417_v31 = vadd.f32 %v1690_v21, %v416_v28 }
  0xd4   : > { %v469_v29 = vmul.f32 %v1237_v22, %v1697_v26  ;;  %v1732_v56 = vadd.s32 4294967288, %v1729_v54 }
  0xd6   : > { %v428_v61 = vpop.f32.mrf.mxu2  ;;  %489 = vadd.xlane.f32.xlu2 %v468_v58  ;;  %v440_v35 = vpop.f32.mrf.mxu3 }
  0xd7   : > { %v429_v63 = vadd.f32 %v1690_v21, %v428_v61  ;;  %v1239_v23 = vpop.eup %1238  ;;  %v441_v37 = vadd.f32 %v1690_v21, %v440_v35 }
  0xd8   : > { %v473_v27 = vmul.f32 %v1239_v23, %v1697_v26 }
  0xd9   : > { %1240 = vtanh.f32 %v429_v63 }
  0xda   : > { %483 = vadd.xlane.f32.xlu1 %v465_v0  ;;  %1242 = vtanh.f32 %v405_v3 }
  0xdb   : > { %497 = vadd.xlane.f32.xlu0 %v472_v2  ;;  %1244 = vtanh.f32 %v438_v4 }
  0xdc   : > { %1246 = vtanh.f32 %v417_v31 }
  0xdd   : > { %1248 = vtanh.f32 %v441_v37 }
  0xdf   : > { %v1241_v25 = vpop.eup %1240 }
  0xe0   : > { %v474_v30 = vmul.f32 %v1241_v25, %v1697_v26  ;;  %v1243_v32 = vpop.eup %1242 }
  0xe1   : > { %v1245_v33 = vpop.eup %1244  ;;  %v466_v34 = vmul.f32 %v1243_v32, %v1697_v26 }
  0xe2   : > { %501 = vadd.xlane.f32.xlu2 %v474_v30  ;;  %499 = vadd.xlane.f32.xlu1 %v473_v27  ;;  %v477_v36 = vmul.f32 %v1245_v33, %v1697_v26  ;;  %v1247_v38 = vpop.eup %1246 }
  0xe3   : > { %491 = vadd.xlane.f32.xlu0 %v469_v29  ;;  %v470_v39 = vmul.f32 %v1247_v38, %v1697_v26  ;;  %v1249_v40 = vpop.eup %1248 }
  0xe4   : > { %v478_v42 = vmul.f32 %v1249_v40, %v1697_v26 }
  0xea   : > { %485 = vadd.xlane.f32.xlu1 %v466_v34 }
  0xeb   : > { %507 = vadd.xlane.f32.xlu0 %v477_v36 }
  0xf2   : > { %493 = vadd.xlane.f32.xlu1 %v470_v39 }
  0xfa   : > { %515 = vperm.xlu2 %1212, %v1217_v41   ;;  %509 = vadd.xlane.f32.xlu1 %v478_v42 }
 0x136   : > { %v480_v44 = vpop.xlane.xlu0 %479 }
 0x139   : > { %v488_v43 = vpop.xlane.xlu2 %487 }
 0x13e   : > { %v504_v46 = vpop.xlane.xlu0 %503 }
 0x141   : > { %v496_v45 = vpop.xlane.xlu2 %495 }
 0x145   : > { %v506_v47 = vpop.xlane.xlu1 %505 }
 0x146   : > { %v482_v21 = vpop.xlane.xlu0 %481 }
 0x149   : > { %v490_v48 = vpop.xlane.xlu2 %489 }
 0x14d   : > { %v484_v49 = vpop.xlane.xlu1 %483 }
 0x14e   : > { %v498_v53 = vpop.xlane.xlu0 %497 }
 0x155   : > { %v502_v50 = vpop.xlane.xlu2 %501  ;;  %v500_v52 = vpop.xlane.xlu1 %499 }
 0x156   : > { %v492_v61 = vpop.xlane.xlu0 %491 }
 0x15d   : > { %v516_v55 = vpop.permute.xlu2 %515  ;;  %v486_v57 = vpop.xlane.xlu1 %485 }
 0x15e   : > { %v1734_v26 = vadd.f32 %v516_v55, %v484_v49  ;;  %v1736_v58 = vadd.f32 %v516_v55, %v480_v44  ;;  %v1738_v59 = vadd.f32 %v516_v55, %v482_v21  ;;  %v1740_v60 = vadd.f32 %v516_v55, %v486_v57  ;;  %v508_v39 = vpop.xlane.xlu0 %507 }
 0x15f   : > { %v1742_v62 = vadd.f32 %v516_v55, %v488_v43  ;;  %v1744_v63 = vadd.f32 %v516_v55, %v490_v48  ;;  %v1758_v23 = vadd.f32 %v516_v55, %v496_v45  ;;  %v1760_v24 = vadd.f32 %v516_v55, %v498_v53 }
 0x160   : > { %v557_v0 = vperm.slane %v1734_v26, %v1729_v54  ;;  %v552_v1 = vperm.slane %v1736_v58, %v1729_v54  ;;  %v554_v2 = vperm.slane %v1738_v59, %v1732_v56  ;;  %v558_v3 = vperm.slane %v1740_v60, %v1732_v56 }
 0x161   : > { %v560_v4 = vperm.slane %v1742_v62, %v1729_v54  ;;  %v561_v22 = vperm.slane %v1744_v63, %v1732_v56  ;;  %v1764_v28 = vadd.f32 %v516_v55, %v492_v61  ;;  %v528_v31 = vadd.f32 %v516_v55, %v500_v52 }
 0x162   : > { %v556_v25 = vsel %vm555_vm1, %v554_v2, %v552_v1  ;;  %v559_v27 = vsel %vm555_vm1, %v558_v3, %v557_v0  ;;  %v1768_v32 = vadd.f32 %v516_v55, %v502_v50  ;;  %v566_v35 = vperm.slane %v1758_v23, %v1729_v54 }
 0x163   : > { %v579_v33 = vsel %vm578_vm2, %v559_v27, %v556_v25  ;;  %v562_v34 = vsel %vm555_vm1, %v561_v22, %v560_v4  ;;  %v567_v36 = vperm.slane %v1760_v24, %v1732_v56  ;;  %v563_v37 = vperm.slane %v1764_v28, %v1729_v54 }
 0x164   : > { %v1780_v40 = vadd.f32 %v516_v55, %v504_v46  ;;  %v531_v41 = vadd.f32 %v516_v55, %v506_v47  ;;  %v581_v43 = vsel %vm580_vm3, %v562_v34, %v579_v33  ;;  %v569_v44 = vperm.slane %v528_v31, %v1729_v54 }
 0x165   : > { %v494_v29 = vpop.xlane.xlu1 %493  ;;  %v570_v45 = vperm.slane %v1768_v32, %v1732_v56  ;;  %v568_v21 = vsel %vm555_vm1, %v567_v36, %v566_v35  ;;  %v1789_v49 = vadd.f32 %v516_v55, %v508_v39 }
 0x166   : > { %v1766_v30 = vadd.f32 %v516_v55, %v494_v29  ;;  %v572_v50 = vperm.slane %v1780_v40, %v1729_v54  ;;  %v573_v51 = vperm.slane %v531_v41, %v1732_v56 }
 0x167   : > { %v571_v53 = vsel %vm555_vm1, %v570_v45, %v569_v44  ;;  %v575_v61 = vperm.slane %v1789_v49, %v1729_v54 }
 0x168   : > { %v564_v38 = vperm.slane %v1766_v30, %v1732_v56  ;;  %v574_v1 = vsel %vm555_vm1, %v573_v51, %v572_v50 }
 0x16a   : > { %v565_v42 = vsel %vm555_vm1, %v564_v38, %v563_v37 }
 0x16b   : > { %v583_v48 = vsel %vm582_vm4, %v565_v42, %v581_v43 }
 0x16c   : > { %v585_v46 = vsel %vm584_vm5, %v568_v21, %v583_v48 }
 0x16d   : > { %v510_v47 = vpop.xlane.xlu1 %509  ;;  %v587_v57 = vsel %vm586_vm6, %v571_v53, %v585_v46 }
 0x16e   : > { %v1795_v52 = vadd.f32 %v516_v55, %v510_v47  ;;  %v589_v55 = vsel %vm588_vm7, %v574_v1, %v587_v57 }
 0x170   : > { %v576_v0 = vperm.slane %v1795_v52, %v1732_v56 }
 0x172   : > { %v577_v2 = vsel %vm555_vm1, %v576_v0, %v575_v61 }
 0x173   : > { %v591_v3 = vsel %vm590_vm8, %v577_v2, %v589_v55 }
 0x174   : > { %v594_v4 = vsel %vm593_vm9, %v591_v3, -inf }
 0x175   : > { %595 = vmax.xlane.f32.xlu0 %v594_v4 }
 0x1e8   : > { %v1808_v22 = vpop.xlane.xlu0 %595 }
 0x1e9   : > { %v599_v25 = vperm.slane %v1808_v22, 1  ;;  %v598_v27 = vperm.slane %v1808_v22, 0  ;;  %v603_v35 = vperm.slane %v1808_v22, 5  ;;  %v600_v36 = vperm.slane %v1808_v22, 2 }
 0x1ea   : > { %v601_v21 = vperm.slane %v1808_v22, 3  ;;  %v602_v61 = vperm.slane %v1808_v22, 4 }
 0x1eb   : > { %v616_v29 = vsub.f32 %v1734_v26, %v599_v25  ;;  %v615_v33 = vsub.f32 %v1738_v59, %v598_v27  ;;  %v614_v34 = vsub.f32 %v1736_v58, %v598_v27  ;;  %v617_v42 = vsub.f32 %v1740_v60, %v599_v25 }
 0x1ec   : > { %v624_v43 = vsub.f32 %v528_v31, %v603_v35  ;;  %v619_v44 = vsub.f32 %v1744_v63, %v600_v36  ;;  %v604_v59 = vperm.slane %v1808_v22, 6  ;;  %v618_v60 = vsub.f32 %v1742_v62, %v600_v36 }
 0x1ed   : > { %v634_v37 = vmul.f32 1.442695, %v616_v29  ;;  %v632_v38 = vmul.f32 1.442695, %v615_v33  ;;  %v630_v39 = vmul.f32 1.442695, %v614_v34  ;;  %v621_v31 = vsub.f32 %v1766_v30, %v601_v21 }
 0x1ee   : > { %v636_v26 = vmul.f32 1.442695, %v617_v42  ;;  %v650_v45 = vmul.f32 1.442695, %v624_v43  ;;  %v640_v48 = vmul.f32 1.442695, %v619_v44  ;;  %v627_v63 = vsub.f32 %v531_v41, %v604_v59 }
 0x1ef   : > { %1250 = vpow2.f32 %v634_v37  ;;  %v638_v50 = vmul.f32 1.442695, %v618_v60  ;;  %v644_v57 = vmul.f32 1.442695, %v621_v31  ;;  %v620_v62 = vsub.f32 %v1764_v28, %v601_v21 }
 0x1f0   : > { %1252 = vpow2.f32 %v632_v38  ;;  %v656_v51 = vmul.f32 1.442695, %v627_v63  ;;  %v623_v30 = vsub.f32 %v1760_v24, %v602_v61  ;;  %v622_v28 = vsub.f32 %v1758_v23, %v602_v61 }
 0x1f1   : > { %1254 = vpow2.f32 %v630_v39  ;;  %v642_v41 = vmul.f32 1.442695, %v620_v62  ;;  %v626_v24 = vsub.f32 %v1780_v40, %v604_v59  ;;  %v605_v33 = vperm.slane %v1808_v22, 7 }
 0x1f2   : > { %1256 = vpow2.f32 %v636_v26  ;;  %v648_v55 = vmul.f32 1.442695, %v623_v30  ;;  %v646_v25 = vmul.f32 1.442695, %v622_v28  ;;  %v625_v36 = vsub.f32 %v1768_v32, %v603_v35 }
 0x1f3   : > { %1258 = vpow2.f32 %v650_v45  ;;  %v654_v29 = vmul.f32 1.442695, %v626_v24  ;;  %v629_v23 = vsub.f32 %v1795_v52, %v605_v33  ;;  %v628_v22 = vsub.f32 %v1789_v49, %v605_v33 }
 0x1f4   : > { %1260 = vpow2.f32 %v640_v48  ;;  %v652_v37 = vmul.f32 1.442695, %v625_v36 }
 0x1f5   : > { %v1820_v58 = vpop.eup %1250  ;;  %1262 = vpow2.f32 %v638_v50  ;;  %v660_v38 = vmul.f32 1.442695, %v629_v23  ;;  %v658_v32 = vmul.f32 1.442695, %v628_v22 }
 0x1f6   : > { %v1823_v46 = vpop.eup %1252  ;;  %685 = vperm.xlu2 %1212, %v1820_v58   ;;  %1264 = vpow2.f32 %v656_v51 }
 0x1f7   : > { %v1826_v47 = vpop.eup %1254  ;;  %682 = vperm.xlu0 %1214, %v1823_v46   ;;  %1266 = vpow2.f32 %v644_v57 }
 0x1f8   : > { %679 = vperm.xlu1 %1213, %v1826_v47   ;;  %v1832_v53 = vpop.eup %1256  ;;  %1268 = vpow2.f32 %v642_v41 }
 0x1f9   : > { %v1835_v0 = vpop.eup %1258  ;;  %1270 = vpow2.f32 %v648_v55 }
 0x1fa   : > { %v1838_v1 = vpop.eup %1260  ;;  %1272 = vpow2.f32 %v646_v25 }
 0x1fb   : > { %v1844_v2 = vpop.eup %1262  ;;  %1274 = vpow2.f32 %v654_v29 }
 0x1fc   : > { %v1846_v3 = vpop.eup %1264  ;;  %1276 = vpow2.f32 %v652_v37 }
 0x1fd   : > { %v1849_v4 = vpop.eup %1266  ;;  %1278 = vpow2.f32 %v660_v38 }
 0x1fe   : > { %688 = vperm.xlu2 %1212, %v1832_v53   ;;  %v1855_v27 = vpop.eup %1268  ;;  %1280 = vpow2.f32 %v658_v32 }
 0x1ff   : > { %709 = vperm.xlu0 %1214, %v1835_v0   ;;  %v1859_v34 = vpop.eup %1270 }
 0x200   : > { %694 = vperm.xlu1 %1213, %v1838_v1   ;;  %v1864_v40 = vpop.eup %1272 }
 0x201   : > { %v1867_v39 = vpop.eup %1274 }
 0x202   : > { %v1871_v35 = vpop.eup %1276 }
 0x203   : > { %v1874_v52 = vpop.eup %1278 }
 0x204   : > { %v1877_v42 = vpop.eup %1280 }
 0x206   : > { %691 = vperm.xlu2 %1212, %v1844_v2  }
 0x207   : > { %718 = vperm.xlu0 %1214, %v1846_v3  }
 0x208   : > { %700 = vperm.xlu1 %1213, %v1849_v4  }
 0x20e   : > { %697 = vperm.xlu2 %1212, %v1855_v27  }
 0x210   : > { %706 = vperm.xlu1 %1213, %v1859_v34  }
 0x216   : > { %703 = vperm.xlu2 %1212, %v1864_v40  }
 0x218   : > { %715 = vperm.xlu1 %1213, %v1867_v39  }
 0x21e   : > { %712 = vperm.xlu2 %1212, %v1871_v35  }
 0x220   : > { %724 = vperm.xlu1 %1213, %v1874_v52  }
 0x226   : > { %721 = vperm.xlu2 %1212, %v1877_v42  }
 0x250   : > { %v686_v43 = vpop.permute.xlu2 %685 }
 0x251   : > { %v729_v24 = vperm.slane %v686_v43, %v1729_v54 }
 0x258   : > { %v689_v44 = vpop.permute.xlu2 %688 }
 0x259   : > { %v730_v62 = vperm.slane %v689_v44, %v1732_v56 }
 0x25b   : > { %v731_v23 = vsel %vm555_vm1, %v730_v62, %v729_v24 }
 0x260   : > { %v692_v49 = vpop.permute.xlu2 %691 }
 0x261   : > { %v732_v41 = vperm.slane %v692_v49, %v1729_v54 }
 0x268   : > { %v698_v45 = vpop.permute.xlu2 %697 }
 0x269   : > { %v683_v48 = vpop.permute.xlu0 %682  ;;  %v735_v25 = vperm.slane %v698_v45, %v1729_v54 }
 0x26a   : > { %v680_v26 = vpop.permute.xlu1 %679  ;;  %v727_v51 = vperm.slane %v683_v48, %v1732_v56 }
 0x26b   : > { %v726_v57 = vperm.slane %v680_v26, %v1729_v54 }
 0x26d   : > { %v728_v29 = vsel %vm555_vm1, %v727_v51, %v726_v57 }
 0x26e   : > { %v750_v22 = vsel %vm578_vm2, %v731_v23, %v728_v29 }
 0x270   : > { %v704_v60 = vpop.permute.xlu2 %703 }
 0x271   : > { %v710_v31 = vpop.permute.xlu0 %709  ;;  %v738_v33 = vperm.slane %v704_v60, %v1729_v54 }
 0x272   : > { %v695_v59 = vpop.permute.xlu1 %694  ;;  %v741_v48 = vperm.slane %v710_v31, %v1729_v54 }
 0x273   : > { %v733_v61 = vperm.slane %v695_v59, %v1732_v56 }
 0x275   : > { %v734_v36 = vsel %vm555_vm1, %v733_v61, %v732_v41 }
 0x276   : > { %v751_v43 = vsel %vm580_vm3, %v734_v36, %v750_v22 }
 0x278   : > { %v713_v50 = vpop.permute.xlu2 %712 }
 0x279   : > { %v719_v37 = vpop.permute.xlu0 %718  ;;  %v742_v49 = vperm.slane %v713_v50, %v1732_v56 }
 0x27a   : > { %v701_v21 = vpop.permute.xlu1 %700  ;;  %v745_v26 = vperm.slane %v719_v37, %v1732_v56 }
 0x27b   : > { %v736_v30 = vperm.slane %v701_v21, %v1732_v56  ;;  %v743_v51 = vsel %vm555_vm1, %v742_v49, %v741_v48 }
 0x27d   : > { %v737_v38 = vsel %vm555_vm1, %v736_v30, %v735_v25 }
 0x27e   : > { %v752_v45 = vsel %vm582_vm4, %v737_v38, %v751_v43 }
 0x280   : > { %v722_v59 = vpop.permute.xlu2 %721 }
 0x281   : > { %v747_v57 = vperm.slane %v722_v59, %v1729_v54 }
 0x282   : > { %v707_v63 = vpop.permute.xlu1 %706 }
 0x283   : > { %v739_v55 = vperm.slane %v707_v63, %v1732_v56 }
 0x285   : > { %v740_v32 = vsel %vm555_vm1, %v739_v55, %v738_v33 }
 0x286   : > { %v753_v21 = vsel %vm584_vm5, %v740_v32, %v752_v45 }
 0x287   : > { %v754_v50 = vsel %vm586_vm6, %v743_v51, %v753_v21 }
 0x28a   : > { %v716_v28 = vpop.permute.xlu1 %715 }
 0x28b   : > { %v744_v44 = vperm.slane %v716_v28, %v1729_v54 }
 0x28d   : > { %v746_v60 = vsel %vm555_vm1, %v745_v26, %v744_v44 }
 0x28e   : > { %v755_v30 = vsel %vm588_vm7, %v746_v60, %v754_v50 }
 0x292   : > { %v725_v63 = vpop.permute.xlu1 %724 }
 0x293   : > { %v748_v61 = vperm.slane %v725_v63, %v1732_v56 }
 0x295   : > { %v749_v62 = vsel %vm555_vm1, %v748_v61, %v747_v57 }
 0x296   : > { %v756_v41 = vsel %vm590_vm8, %v749_v62, %v755_v30 }
 0x297   : > { %v758_v31 = vsel %vm593_vm9, %v756_v41, 0.0 }
 0x298   : > { %759 = vadd.xlane.f32.xlu0 %v758_v31 }
 0x30b   : > { %v760_v55 = vpop.xlane.xlu0 %759 }
 0x30c   : > { %1282 = vrcp.f32 %v760_v55 }
 0x312   : > { %v1283_v28 = vpop.eup %1282 }
 0x313   : > { %v769_v24 = vperm.slane %v1283_v28, 6  ;;  %v763_v25 = vperm.slane %v1283_v28, 0  ;;  %v764_v23 = vperm.slane %v1283_v28, 1  ;;  %v765_v22 = vperm.slane %v1283_v28, 2 }
 0x314   : > { %v767_v43 = vperm.slane %v1283_v28, 4 }
 0x315   : > { %v791_v29 = vmul.f32 %v1867_v39, %v769_v24  ;;  %v780_v33 = vmul.f32 %v1823_v46, %v763_v25  ;;  %v779_v36 = vmul.f32 %v1826_v47, %v763_v25  ;;  %v782_v37 = vmul.f32 %v1832_v53, %v764_v23 }
 0x316   : > { %v781_v38 = vmul.f32 %v1820_v58, %v764_v23  ;;  %v784_v32 = vmul.f32 %v1838_v1, %v765_v22  ;;  %v783_v44 = vmul.f32 %v1844_v2, %v765_v22  ;;  %v766_v46 = vperm.slane %v1283_v28, 3 }
 0x317   : > { %857 = vperm.xlu0 %1214, %v791_v29   ;;  %802 = vperm.xlu1 %1213, %v780_v33   ;;  %v788_v53 = vmul.f32 %v1859_v34, %v767_v43  ;;  %v787_v58 = vmul.f32 %v1864_v40, %v767_v43  ;;  %v768_v1 = vperm.slane %v1283_v28, 5  ;;  %v792_v26 = vmul.f32 %v1846_v3, %v769_v24 }
 0x318   : > { %797 = vperm.xlu2 %1212, %v779_v36   ;;  %v786_v47 = vmul.f32 %v1849_v4, %v766_v46  ;;  %v785_v39 = vmul.f32 %v1855_v27, %v766_v46  ;;  %v770_v4 = vperm.slane %v1283_v28, 7 }
 0x319   : > { %v790_v2 = vmul.f32 %v1871_v35, %v768_v1  ;;  %v789_v49 = vmul.f32 %v1835_v0, %v768_v1 }
 0x31a   : > { %v793_v27 = vmul.f32 %v1877_v42, %v770_v4  ;;  %v794_v34 = vmul.f32 %v1874_v52, %v770_v4 }
 0x31f   : > { %812 = vperm.xlu1 %1213, %v782_v37  }
 0x320   : > { %807 = vperm.xlu2 %1212, %v781_v38  }
 0x327   : > { %822 = vperm.xlu1 %1213, %v784_v32  }
 0x328   : > { %817 = vperm.xlu2 %1212, %v783_v44  }
 0x32f   : > { %832 = vperm.xlu1 %1213, %v786_v47  }
 0x330   : > { %827 = vperm.xlu2 %1212, %v785_v39  }
 0x337   : > { %842 = vperm.xlu1 %1213, %v788_v53  }
 0x338   : > { %837 = vperm.xlu2 %1212, %v787_v58  }
 0x33f   : > { %852 = vperm.xlu1 %1213, %v790_v2  }
 0x340   : > { %847 = vperm.xlu2 %1212, %v789_v49  }
 0x347   : > { %867 = vperm.xlu1 %1213, %v793_v27  }
 0x348   : > { %862 = vperm.xlu2 %1212, %v792_v26  }
 0x350   : > { %872 = vperm.xlu2 %1212, %v794_v34  }
 0x372   : > { %v1928_v40 = vpop.permute.xlu2 %797 }
 0x373   : > { %v875_v45 = vmul.f32 %v1928_v40, %v1608_v5 }
 0x375   : > { %891 = vst.msk [vmem:[%s1934_s10] sm:$0xff] %vm329_vm0, %v875_v45 }
 0x37a   : > { %v808_v0 = vpop.permute.xlu2 %807 }
 0x37b   : > { %v877_v3 = vmul.f32 %v808_v0, %v1648_v13 }
 0x37d   : > { %893 = vst.msk [vmem:[%s1934_s10 + $0x10] sm:$0xff] %vm329_vm0, %v877_v3 }
 0x382   : > { %v818_v35 = vpop.permute.xlu2 %817 }
 0x383   : > { %v879_v5 = vmul.f32 %v818_v35, %v1619_v8  ;;  %v913_v55 = vperm.slane %v818_v35, %v1729_v54 }
 0x385   : > { %895 = vst.msk [vmem:[%s1934_s10 + $0x20] sm:$0xff] %vm329_vm0, %v879_v5 }
 0x389   : > { %v1944_v52 = vpop.permute.xlu0 %857  ;;  %v803_v42 = vpop.permute.xlu1 %802 }
 0x38a   : > { %v887_v59 = vmul.f32 %v1944_v52, %v1614_v7  ;;  %v876_v48 = vmul.f32 %v803_v42, %v1628_v9  ;;  %v828_v21 = vpop.permute.xlu2 %827  ;;  %v908_v31 = vperm.slane %v803_v42, %v1732_v56  ;;  %v925_v58 = vperm.slane %v1944_v52, %v1729_v54 }
 0x38b   : > { %v881_v13 = vmul.f32 %v828_v21, %v1659_v16  ;;  %v916_v25 = vperm.slane %v828_v21, %v1729_v54 }
 0x38c   : > { %903 = vst.msk [vmem:[%s1934_s10 + $0x60] sm:$0xff] %vm329_vm0, %v887_v59 }
 0x38d   : > { %892 = vst.msk [vmem:[%s1934_s10 + $0x8] sm:$0xff] %vm329_vm0, %v876_v48 }
 0x38e   : > { %897 = vst.msk [vmem:[%s1934_s10 + $0x30] sm:$0xff] %vm329_vm0, %v881_v13 }
 0x391   : > { %v813_v8 = vpop.permute.xlu1 %812 }
 0x392   : > { %v878_v60 = vmul.f32 %v813_v8, %v1668_v17  ;;  %v838_v63 = vpop.permute.xlu2 %837  ;;  %v911_v41 = vperm.slane %v813_v8, %v1732_v56 }
 0x393   : > { %v883_v7 = vmul.f32 %v838_v63, %v1611_v6  ;;  %v919_v23 = vperm.slane %v838_v63, %v1729_v54 }
 0x394   : > { %894 = vst.msk [vmem:[%s1934_s10 + $0x18] sm:$0xff] %vm329_vm0, %v878_v60 }
 0x395   : > { %899 = vst.msk [vmem:[%s1934_s10 + $0x40] sm:$0xff] %vm329_vm0, %v883_v7 }
 0x399   : > { %v823_v9 = vpop.permute.xlu1 %822 }
 0x39a   : > { %v880_v16 = vmul.f32 %v823_v9, %v1639_v12  ;;  %v848_v51 = vpop.permute.xlu2 %847 }
 0x39b   : > { %v885_v57 = vmul.f32 %v848_v51, %v1651_v14  ;;  %v922_v22 = vperm.slane %v848_v51, %v1729_v54 }
 0x39c   : > { %896 = vst.msk [vmem:[%s1934_s10 + $0x28] sm:$0xff] %vm329_vm0, %v880_v16 }
 0x39d   : > { %901 = vst.msk [vmem:[%s1934_s10 + $0x50] sm:$0xff] %vm329_vm0, %v885_v57 }
 0x3a1   : > { %v833_v17 = vpop.permute.xlu1 %832 }
 0x3a2   : > { %v882_v6 = vmul.f32 %v833_v17, %v1679_v20  ;;  %v863_v61 = vpop.permute.xlu2 %862  ;;  %v914_v20 = vperm.slane %v823_v9, %v1732_v56 }
 0x3a3   : > { %v888_v50 = vmul.f32 %v863_v61, %v1634_v11  ;;  %v910_v11 = vperm.slane %v808_v0, %v1729_v54  ;;  %v926_v43 = vperm.slane %v863_v61, %v1732_v56 }
 0x3a4   : > { %898 = vst.msk [vmem:[%s1934_s10 + $0x38] sm:$0xff] %vm329_vm0, %v882_v6  ;;  %v915_v37 = vsel %vm555_vm1, %v914_v20, %v913_v55 }
 0x3a5   : > { %904 = vst.msk [vmem:[%s1934_s10 + $0x68] sm:$0xff] %vm329_vm0, %v888_v50  ;;  %v912_v29 = vsel %vm555_vm1, %v911_v41, %v910_v11  ;;  %v927_v26 = vsel %vm555_vm1, %v926_v43, %v925_v58 }
 0x3a9   : > { %v843_v12 = vpop.permute.xlu1 %842 }
 0x3aa   : > { %v884_v62 = vmul.f32 %v843_v12, %v1631_v10  ;;  %v873_v30 = vpop.permute.xlu2 %872  ;;  %v917_v10 = vperm.slane %v833_v17, %v1732_v56  ;;  %v920_v28 = vperm.slane %v843_v12, %v1732_v56 }
 0x3ab   : > { %v890_v14 = vmul.f32 %v873_v30, %v1674_v19  ;;  %v907_v19 = vperm.slane %v1928_v40, %v1729_v54  ;;  %v929_v49 = vperm.slane %v873_v30, %v1732_v56 }
 0x3ac   : > { %900 = vst.msk [vmem:[%s1934_s10 + $0x48] sm:$0xff] %vm329_vm0, %v884_v62  ;;  %v918_v32 = vsel %vm555_vm1, %v917_v10, %v916_v25  ;;  %v921_v44 = vsel %vm555_vm1, %v920_v28, %v919_v23 }
 0x3ad   : > { %906 = vst.msk [vmem:[%s1934_s10 + $0x78] sm:$0xff] %vm329_vm0, %v890_v14  ;;  %v909_v38 = vsel %vm555_vm1, %v908_v31, %v907_v19 }
 0x3b1   : > { %v853_v24 = vpop.permute.xlu1 %852 }
 0x3b2   : > { %v886_v33 = vmul.f32 %v853_v24, %v1671_v18  ;;  %v923_v36 = vperm.slane %v853_v24, %v1732_v56  ;;  %v931_v18 = vsel %vm578_vm2, %v912_v29, %v909_v38 }
 0x3b3   : > { %v932_v46 = vsel %vm580_vm3, %v915_v37, %v931_v18 }
 0x3b4   : > { %902 = vst.msk [vmem:[%s1934_s10 + $0x58] sm:$0xff] %vm329_vm0, %v886_v33  ;;  %v924_v47 = vsel %vm555_vm1, %v923_v36, %v922_v22  ;;  %v933_v39 = vsel %vm582_vm4, %v918_v32, %v932_v46 }
 0x3b5   : > { %v934_v53 = vsel %vm584_vm5, %v921_v44, %v933_v39 }
 0x3b6   : > { %v935_v1 = vsel %vm586_vm6, %v924_v47, %v934_v53 }
 0x3b7   : > { %v936_v40 = vsel %vm588_vm7, %v927_v26, %v935_v1 }
 0x3b9   : > { %v868_v2 = vpop.permute.xlu1 %867 }
 0x3ba   : > { %v889_v4 = vmul.f32 %v868_v2, %v1654_v15  ;;  %v928_v27 = vperm.slane %v868_v2, %v1729_v54 }
 0x3bc   : > { %905 = vst.msk [vmem:[%s1934_s10 + $0x70] sm:$0xff] %vm329_vm0, %v889_v4  ;;  %v930_v34 = vsel %vm555_vm1, %v929_v49, %v928_v27 }
 0x3bd   : > { %v937_v45 = vsel %vm590_vm8, %v930_v34, %v936_v40 }
 0x3be   : > { %1371 = shalt.err (!%p1368_p10)
}
 0x3bf   : > { %s1452_s16 = smov 128   ;;  %s1453_s4 = smov 8   ;;  %939 = vst.msk [vmem:[%s2024_s28] sm:$0xff] %vm593_vm9, %v937_v45 }
 0x3c0   : > { %1151 = dma.vmem_to_hbm [thread:$0]  (%p1561_p3), %s2017_s19, 2048, %s2019_s13, %s941_s7, %s1452_s16, %s1452_s16, %s1453_s4  }
 0x3c1   : > { %s946_s20 = scalar_lea.sflag [#allocation10], %s1591_s8  ;;  %s1386_s22 = sshra.s32 %s2037_s14, 4  ;;  %s1387_s22 = int_to_ptr.hbm [resolvable:$true] %s1386_s22 }
 0x3c2   : > { %s1388_s11 = scalar_lea.hbm %s1387_s22, 8  ;;  %s1392_s21 = scalar_lea.hbm %s2094_s6, 16 }
 0x3c3   : > { %p1389_p12 = scmp.ne.s32.totalorder %s1387_s22, %s1388_s11  ;;  %p1393_p5 = scmp.lt.s32.totalorder %s1387_s22, %s2094_s6 }
 0x3c4   : > { %p1394_p7 = scmp.lt.s32.totalorder %s1392_s21, %s1388_s11 }
 0x3c5   : > { %p1390_p13 = pnand %p1389_p12, %p1561_p3 }
 0x3c6   : > { %p1395_p1 = por %p1394_p7, %p1393_p5 }
 0x3c7   : > { %p1391_p0 = pneg %p1390_p13 }
 0x3c9   : > { %p1396_p4 = pnand %p1395_p1, %p1391_p0 }
 0x3cb   : > { %1399 = shalt.err (!%p1396_p4)
}
 0x3cc   : > { %1152 = dma.vmem_to_hbm [thread:$0]  (%p1561_p3), %s2035_s9, 128, %s2037_s14, %s946_s20  }
 0x3cd PF: > { %s990_s8 = sand.u32 1, %s1434_s23   ;;  %p2102_p8 = scmp.ge.s32.totalorder %s1446_s26, 2 }
 0x3ce   : > { %s991_s19 = scalar_lea.sflag [#allocation5], %s990_s8 }
 0x3cf   : > { %p1164_p11 = pnand %p2102_p8, %p1527_p6 }
 0x3d1   : > { %p1165_p9 = pneg %p1164_p11 }
 0x3d3   : > { %1425 = dma.done.wait (%p1165_p9), %s991_s19, 2048  }
 0x3d4   : > { %1427 = vsyncadd (%p1165_p9), %s991_s19, 4294965248  ;;  %s1001_s13 = scalar_lea.sflag [#allocation10], %s990_s8 }
 0x3d5   : > { %1429 = dma.done.wait (%p1165_p9), %s1001_s13, 128  }
 0x3d6   : > { %1431 = vsyncadd (%p1165_p9), %s1001_s13, 4294967168  ;;  %p26_p3 = scmp.ge.s32.totalorder %s1545_s12, 4   ;;  %s2103_s23 = smov %s1438_s24 }
 0x3d7   : > { %s2104_s24 = smov %s1442_s25  ;;  %s2105_s25 = smov %s1557_s17 }
 0x3d8   : > { %s2106_s26 = smov %s1545_s12  ;;  %28 = sbr.rel (!%p26_p3) target bundleno = 11 (0xb), region = 106 }
 0x3dd   :  { %1007 = vsyncpa [#allocation4], 1 }
 0x3de   :  { %1009 = vsyncpa [#allocation4 + $0x1], 1 }
 0x3df   :  { %1010 = vsyncpa [#allocation7], 1 }
 0x3e0   :  { %1011 = vsyncpa [#allocation5], 1 }
 0x3e1   :  { %1013 = vsyncpa [#allocation5 + $0x1], 1 }
 0x3e2   :  { %1014 = vsyncpa [#allocation10], 1 }
 0x3e3   :  { %1016 = vsyncpa [#allocation10 + $0x1], 1 }

</bundles_post_ra>
